<compile_context>
chip_gen: v7x
topology: tpu7x:2x2x1
jax: 0.10.0
libtpu: 0.0.40
codegen_flags: <defaults>
</compile_context>

<pallas_src>
import functools

import jax
import jax.numpy as jnp
from jax import lax
from jax.experimental import pallas as pl
from jax.experimental.pallas import tpu as pltpu

_LOG_SCALE_CLIP = 13.8155


def _round_up(x, m):
    return ((x + m - 1) // m) * m


def space2depth(x):
    """(B, C, H, W) -> (B, 4C, H/2, W/2), channel order (r1, r2, c)."""
    B, C, H, W = x.shape
    x = x.reshape(B, C, H // 2, 2, W // 2, 2)
    x = x.transpose(0, 3, 5, 1, 2, 4)
    return x.reshape(B, 4 * C, H // 2, W // 2)


def prefitter_kernel(x_ref, mask_ref, w_ref, b_ref, p1_ref, rs_ref, out_ref, *,
                     npc, w_stride, half, min_p, conv_dtype):
    """One (batch, row-tile) grid step.

    x_ref   : (12, LT)   f32        flattened padded rows of this tile (+1-row halo)
    mask_ref: (1, NPC)   f32        1.0 at valid output positions, else 0.0
    w_ref   : (9, 27, 9) conv_dtype packed fused conv weights (tap, out, in)
    b_ref   : (27, 1)    f32        packed biases (same row order as outputs)
    p1_ref  : (3, 3)     f32        group-1 constants, cols = (mu0, inv_scale0, ar0)
    rs_ref  : (9, 2)     f32        row-select masks (row%3==1, row%3==2)
    out_ref : (1, 1)     f32        partial rate sum for this (batch, tile)
    """
    mask = mask_ref[...]                                   # (1, NPC)

    # ---- fused prior_ar1/2/3 3x3 convs on the MXU: 9 taps, f32 accumulation ----
    acc = jnp.zeros((27, npc), jnp.float32)
    for di in range(3):
        for dj in range(3):
            off = di * w_stride + dj
            tap = x_ref[0:9, off:off + npc].astype(conv_dtype)     # (9, NPC)
            acc = acc + jnp.dot(w_ref[di * 3 + dj], tap,
                                preferred_element_type=jnp.float32)
    acc = acc + b_ref[...]                                 # bias broadcast (once)

    ctr = w_stride + 1
    x = x_ref[:, ctr:ctr + npc]                            # (12, NPC) targets

    mu_c = acc[0:9]                                        # g2..g4 mu rows (rgb each)
    inv_c = jnp.exp(0.5 * jnp.clip(acc[9:18], -_LOG_SCALE_CLIP, _LOG_SCALE_CLIP))
    ar_c = acc[18:27]                                      # alpha, beta, gamma rows

    def roll_rows(a, k):
        c = a.shape[0]
        return jnp.concatenate([a[c - k:], a[:c - k]], axis=0)

    def rate_block(xt, mu_base, inv_s, ar):
        # xt: (C, NPC); mu_base/inv_s/ar: (C, NPC) or (C, 1) (broadcast)
        c = xt.shape[0]
        m1 = rs_ref[0:c, 0:1]
        m2 = rs_ref[0:c, 1:2]
        xs1 = roll_rows(xt, 1)
        xs2 = roll_rows(xt, 2)
        ar1 = roll_rows(ar, 1)
        # weak color AR: mu_g += x_r*alpha ; mu_b += x_r*beta + x_g*gamma
        mu = mu_base + m1 * (xs1 * ar1) + m2 * (xs2 * ar1 + xs1 * ar)
        zc = (xt - mu) * inv_s
        zh = half * inv_s
        # sigmoid(a) - sigmoid(b) == 0.5*(tanh(a/2) - tanh(b/2)) : 1 EUP op each
        p = 0.5 * (jnp.tanh(0.5 * (zc + zh)) - jnp.tanh(0.5 * (zc - zh)))
        rate = -jnp.log2(jnp.clip(p, min_p, 1.0))
        return jnp.sum(rate * mask)

    total = rate_block(x[0:3], p1_ref[:, 0:1], p1_ref[:, 1:2], p1_ref[:, 2:3])
    total = total + rate_block(x[3:12], mu_c, inv_c, ar_c)

    out_ref[...] = jnp.reshape(total, (1, 1))


def prefitter_forward(x, param0, w1, b1, w2, b2, w3, b3,
                      bit_depth=8, freq_precision=16,
                      target_positions=8192, conv_dtype=jnp.bfloat16):
    """Prefitter.forward: returns the scalar img_bpd.

    conv_dtype: dtype of the MXU conv operands (bf16 default; pass jnp.float32
    for exact f32 conv).  The rate/sigmoid/log2 path is always f32.
    """
    B, C, H, W = x.shape
    assert C == 3 and H % 2 == 0 and W % 2 == 0
    h, w = H // 2, W // 2
    row_stride = w + 2                                     # padded row width

    rows_per_tile = max(1, min(h, max(1, target_positions // row_stride)))
    n_tiles = -(-h // rows_per_tile)
    npc = _round_up(rows_per_tile * row_stride, 128)       # lane-dense compute width
    lt = _round_up(npc + 2 * row_stride + 2, 128)          # block width incl. halo

    # --- space2depth, zero "glue" padding, flatten rows, cut row-tiles + halo ---
    xr = space2depth(x).astype(jnp.float32)                # (B, 12, h, w)
    pad_bottom = 1 + n_tiles * rows_per_tile - h
    xpe = jnp.pad(xr, ((0, 0), (0, 0), (1, pad_bottom), (1, 1)))
    flat = xpe.reshape(B, 12, -1)
    tail = (n_tiles - 1) * rows_per_tile * row_stride + lt - flat.shape[2]
    if tail > 0:
        flat = jnp.pad(flat, ((0, 0), (0, 0), (0, tail)))
    tiles = jnp.stack(
        [lax.dynamic_slice_in_dim(flat, t * rows_per_tile * row_stride, lt, axis=2)
         for t in range(n_tiles)], axis=1)                 # (B, n_tiles, 12, lt)

    # --- per-tile validity mask (right border cols, bottom rows, lane overhang) ---
    pos = jnp.arange(npc)
    col = pos % row_stride
    row = pos // row_stride
    tidx = jnp.arange(n_tiles)[:, None]
    valid = ((pos[None, :] < rows_per_tile * row_stride)
             & (col[None, :] < w)
             & ((tidx * rows_per_tile + row[None, :]) < h))
    mask = valid.astype(jnp.float32).reshape(n_tiles, 1, npc)

    # --- fuse the three convs into one packed weight tensor ---
    def padc(wt):
        return jnp.pad(wt.astype(jnp.float32),
                       ((0, 0), (0, 9 - wt.shape[1]), (0, 0), (0, 0)))
    ws = [padc(w1), padc(w2), padc(w3)]
    bs = [b1.astype(jnp.float32), b2.astype(jnp.float32), b3.astype(jnp.float32)]
    wrows, brows = [], []
    for blk in range(3):                                   # mu, log_scale, ar
        for g in range(3):                                 # prior_ar1/2/3
            wrows.append(ws[g][3 * blk:3 * blk + 3])
            brows.append(bs[g][3 * blk:3 * blk + 3])
    wcat = jnp.concatenate(wrows, axis=0)                  # (27, 9, 3, 3)
    wpack = jnp.transpose(wcat, (2, 3, 0, 1)).reshape(9, 27, 9).astype(conv_dtype)
    bpack = jnp.concatenate(brows).reshape(27, 1)

    # --- group 1 (param0) as per-channel scalars; scale exp done on the host ---
    p0 = param0.reshape(9).astype(jnp.float32)
    inv0 = jnp.exp(0.5 * jnp.clip(p0[3:6], -_LOG_SCALE_CLIP, _LOG_SCALE_CLIP))
    p1c = jnp.stack([p0[0:3], inv0, p0[6:9]], axis=1)      # (3, 3)

    rowsel = jnp.asarray([[1.0 if r % 3 == 1 else 0.0,
                           1.0 if r % 3 == 2 else 0.0] for r in range(9)],
                         dtype=jnp.float32)                # (9, 2)

    maxv = float((1 << bit_depth) - 1)
    kernel = functools.partial(prefitter_kernel, npc=npc, w_stride=row_stride,
                               half=0.5 / maxv, min_p=2.0 ** (-freq_precision),
                               conv_dtype=conv_dtype)

    partials = pl.pallas_call(
        kernel,
        out_shape=jax.ShapeDtypeStruct((B, n_tiles, 1, 1), jnp.float32),
        grid_spec=pltpu.PrefetchScalarGridSpec(
            num_scalar_prefetch=0,
            grid=(B, n_tiles),
            in_specs=[
                pl.BlockSpec((None, None, 12, lt), lambda b, t: (b, t, 0, 0)),
                pl.BlockSpec((None, 1, npc), lambda b, t: (t, 0, 0)),
                pl.BlockSpec((9, 27, 9), lambda b, t: (0, 0, 0)),
                pl.BlockSpec((27, 1), lambda b, t: (0, 0)),
                pl.BlockSpec((3, 3), lambda b, t: (0, 0)),
                pl.BlockSpec((9, 2), lambda b, t: (0, 0)),
            ],
            out_specs=pl.BlockSpec((None, None, 1, 1), lambda b, t: (b, t, 0, 0)),
        ),
        compiler_params=pltpu.CompilerParams(
            dimension_semantics=("parallel", "parallel"),
            vmem_limit_bytes=48 * 1024 * 1024),
    )(tiles, mask, wpack, bpack, p1c, rowsel)

    return jnp.sum(partials) / x.size


def prefitter_forward_ref(x, param0, w1, b1, w2, b2, w3, b3,
                          bit_depth=8, freq_precision=16):
    """Pure-JAX f32 reference (same semantics) for a correctness check."""
    B, C, H, W = x.shape
    h, w = H // 2, W // 2
    xr = space2depth(x)
    maxv = float((1 << bit_depth) - 1)
    half = 0.5 / maxv
    min_p = 2.0 ** (-freq_precision)

    def conv(xin, wt, bi):
        y = lax.conv_general_dilated(xin, wt, (1, 1), "SAME",
                                     dimension_numbers=("NCHW", "OIHW", "NCHW"))
        return y + bi.reshape(1, -1, 1, 1)

    def rate(params, target):
        mu, log_scale, pp = params[:, :3], params[:, 3:6], params[:, 6:9]
        x_r, x_g = target[:, 0:1], target[:, 1:2]
        mu_all = jnp.concatenate([
            mu[:, 0:1],
            mu[:, 1:2] + x_r * pp[:, 0:1],
            mu[:, 2:3] + x_r * pp[:, 1:2] + x_g * pp[:, 2:3]], axis=1)
        scale = jnp.exp(-0.5 * jnp.clip(log_scale, -_LOG_SCALE_CLIP, _LOG_SCALE_CLIP))
        p = (jax.nn.sigmoid((target - mu_all + half) / scale)
             - jax.nn.sigmoid((target - mu_all - half) / scale))
        return -jnp.log2(jnp.clip(p, min_p, 1.0))

    params1 = jnp.broadcast_to(param0, (B, 9, h, w))
    params2 = conv(xr[:, :3], w1, b1)
    params3 = conv(xr[:, :6], w2, b2)
    params4 = conv(xr[:, :9], w3, b3)
    total = (rate(params1, xr[:, 0:3]).sum() + rate(params2, xr[:, 3:6]).sum()
             + rate(params3, xr[:, 6:9]).sum() + rate(params4, xr[:, 9:12]).sum())
    return total / x.size


if __name__ == "__main__":
    key = jax.random.PRNGKey(0)
    ks = jax.random.split(key, 8)
    B, C, H, W = 2, 3, 16, 16
    x = jax.random.uniform(ks[0], (B, C, H, W), jnp.float32)

    # Deterministic synthetic parameters (matching nn.Module shapes).
    param0 = jnp.zeros((1, 9, 1, 1), jnp.float32)                    # nn.Parameter zeros
    w1 = 0.1 * jax.random.normal(ks[1], (9, 3, 3, 3), jnp.float32)   # Conv2d(3, 9, 3)
    b1 = 0.01 * jax.random.normal(ks[2], (9,), jnp.float32)
    w2 = 0.1 * jax.random.normal(ks[3], (9, 6, 3, 3), jnp.float32)   # Conv2d(6, 9, 3)
    b2 = 0.01 * jax.random.normal(ks[4], (9,), jnp.float32)
    w3 = 0.1 * jax.random.normal(ks[5], (9, 9, 3, 3), jnp.float32)   # Conv2d(9, 9, 3)
    b3 = 0.01 * jax.random.normal(ks[6], (9,), jnp.float32)

    img_bpd = prefitter_forward(x, param0, w1, b1, w2, b2, w3, b3)
    img_bpd = jax.block_until_ready(img_bpd)

    ref_bpd = prefitter_forward_ref(x, param0, w1, b1, w2, b2, w3, b3)
    assert jnp.isfinite(img_bpd), img_bpd
    assert abs(float(img_bpd) - float(ref_bpd)) < 3e-3 * max(1.0, abs(float(ref_bpd))), \
        (float(img_bpd), float(ref_bpd))

    print("KERNEL_OK")
</pallas_src>

<mosaic_0001>
module attributes {stable_mosaic.version = 11 : i64} {
  func.func @prefitter_kernel(%arg0: i32, %arg1: i32, %arg2: memref<1x1x12x256xf32, #tpu.memory_space<vmem>>, %arg3: memref<1x1x128xf32, #tpu.memory_space<vmem>>, %arg4: memref<9x27x9xbf16, #tpu.memory_space<vmem>>, %arg5: memref<27x1xf32, #tpu.memory_space<vmem>>, %arg6: memref<3x3xf32, #tpu.memory_space<vmem>>, %arg7: memref<9x2xf32, #tpu.memory_space<vmem>>, %arg8: memref<1x1x1x1xf32, #tpu.memory_space<vmem>>) attributes {dimension_semantics = [#tpu.dimension_semantics<parallel>, #tpu.dimension_semantics<parallel>], iteration_bounds = array<i64: 2, 1>, scalar_prefetch = 0 : i64, scratch_operands = 0 : i64, tpu.core_type = #tpu.core_type<tc>, window_params = [{transform_indices = @transform_0, window_bounds = array<i64: 1, 1, 12, 256>}, {transform_indices = @transform_1, window_bounds = array<i64: 1, 1, 128>}, {pipeline_mode = #tpu.pipeline_mode<synchronous>, transform_indices = @transform_2, window_bounds = array<i64: 9, 27, 9>}, {pipeline_mode = #tpu.pipeline_mode<synchronous>, transform_indices = @transform_3, window_bounds = array<i64: 27, 1>}, {pipeline_mode = #tpu.pipeline_mode<synchronous>, transform_indices = @transform_4, window_bounds = array<i64: 3, 3>}, {pipeline_mode = #tpu.pipeline_mode<synchronous>, transform_indices = @transform_5, window_bounds = array<i64: 9, 2>}, {transform_indices = @transform_6, window_bounds = array<i64: 1, 1, 1, 1>}]} {
    %c0 = arith.constant 0 : index
    %c0_0 = arith.constant 0 : index
    %c0_1 = arith.constant 0 : index
    %0 = vector.load %arg3[%c0, %c0_0, %c0_1] : memref<1x1x128xf32, #tpu.memory_space<vmem>>, vector<1x1x128xf32>
    %1 = vector.shape_cast %0 : vector<1x1x128xf32> to vector<1x128xf32>
    %cst = arith.constant 0.000000e+00 : f32
    %2 = vector.broadcast %cst : f32 to vector<27x128xf32>
    %c0_2 = arith.constant 0 : index
    %c0_3 = arith.constant 0 : index
    %c0_4 = arith.constant 0 : index
    %c0_5 = arith.constant 0 : index
    %3 = vector.load %arg2[%c0_2, %c0_3, %c0_4, %c0_5] : memref<1x1x12x256xf32, #tpu.memory_space<vmem>>, vector<1x1x9x128xf32>
    %4 = vector.shape_cast %3 : vector<1x1x9x128xf32> to vector<9x128xf32>
    %5 = arith.truncf %4 : vector<9x128xf32> to vector<9x128xbf16>
    %c0_6 = arith.constant 0 : index
    %c0_7 = arith.constant 0 : index
    %c0_8 = arith.constant 0 : index
    %6 = vector.load %arg4[%c0_6, %c0_7, %c0_8] : memref<9x27x9xbf16, #tpu.memory_space<vmem>>, vector<1x27x9xbf16>
    %7 = vector.shape_cast %6 : vector<1x27x9xbf16> to vector<27x9xbf16>
    %cst_9 = arith.constant dense<0.000000e+00> : vector<27x128xf32>
    %8 = tpu.matmul %7, %5, %cst_9 {dimension_numbers = #tpu.dot_dimension_numbers<[1], [0], [0], [1], [0, 0, 1, 1], [], []>} : vector<27x9xbf16>, vector<9x128xbf16>, vector<27x128xf32> -> vector<27x128xf32>
    %9 = arith.addf %2, %8 : vector<27x128xf32>
    %c0_10 = arith.constant 0 : index
    %c0_11 = arith.constant 0 : index
    %c0_12 = arith.constant 0 : index
    %c1 = arith.constant 1 : index
    %10 = vector.load %arg2[%c0_10, %c0_11, %c0_12, %c1] : memref<1x1x12x256xf32, #tpu.memory_space<vmem>>, vector<1x1x9x128xf32>
    %11 = vector.shape_cast %10 : vector<1x1x9x128xf32> to vector<9x128xf32>
    %12 = arith.truncf %11 : vector<9x128xf32> to vector<9x128xbf16>
    %c1_13 = arith.constant 1 : index
    %c0_14 = arith.constant 0 : index
    %c0_15 = arith.constant 0 : index
    %13 = vector.load %arg4[%c1_13, %c0_14, %c0_15] : memref<9x27x9xbf16, #tpu.memory_space<vmem>>, vector<1x27x9xbf16>
    %14 = vector.shape_cast %13 : vector<1x27x9xbf16> to vector<27x9xbf16>
    %cst_16 = arith.constant dense<0.000000e+00> : vector<27x128xf32>
    %15 = tpu.matmul %14, %12, %cst_16 {dimension_numbers = #tpu.dot_dimension_numbers<[1], [0], [0], [1], [0, 0, 1, 1], [], []>} : vector<27x9xbf16>, vector<9x128xbf16>, vector<27x128xf32> -> vector<27x128xf32>
    %16 = arith.addf %9, %15 : vector<27x128xf32>
    %c0_17 = arith.constant 0 : index
    %c0_18 = arith.constant 0 : index
    %c0_19 = arith.constant 0 : index
    %c2 = arith.constant 2 : index
    %17 = vector.load %arg2[%c0_17, %c0_18, %c0_19, %c2] : memref<1x1x12x256xf32, #tpu.memory_space<vmem>>, vector<1x1x9x128xf32>
    %18 = vector.shape_cast %17 : vector<1x1x9x128xf32> to vector<9x128xf32>
    %19 = arith.truncf %18 : vector<9x128xf32> to vector<9x128xbf16>
    %c2_20 = arith.constant 2 : index
    %c0_21 = arith.constant 0 : index
    %c0_22 = arith.constant 0 : index
    %20 = vector.load %arg4[%c2_20, %c0_21, %c0_22] : memref<9x27x9xbf16, #tpu.memory_space<vmem>>, vector<1x27x9xbf16>
    %21 = vector.shape_cast %20 : vector<1x27x9xbf16> to vector<27x9xbf16>
    %cst_23 = arith.constant dense<0.000000e+00> : vector<27x128xf32>
    %22 = tpu.matmul %21, %19, %cst_23 {dimension_numbers = #tpu.dot_dimension_numbers<[1], [0], [0], [1], [0, 0, 1, 1], [], []>} : vector<27x9xbf16>, vector<9x128xbf16>, vector<27x128xf32> -> vector<27x128xf32>
    %23 = arith.addf %16, %22 : vector<27x128xf32>
    %c0_24 = arith.constant 0 : index
    %c0_25 = arith.constant 0 : index
    %c0_26 = arith.constant 0 : index
    %c10 = arith.constant 10 : index
    %24 = vector.load %arg2[%c0_24, %c0_25, %c0_26, %c10] : memref<1x1x12x256xf32, #tpu.memory_space<vmem>>, vector<1x1x9x128xf32>
    %25 = vector.shape_cast %24 : vector<1x1x9x128xf32> to vector<9x128xf32>
    %26 = arith.truncf %25 : vector<9x128xf32> to vector<9x128xbf16>
    %c3 = arith.constant 3 : index
    %c0_27 = arith.constant 0 : index
    %c0_28 = arith.constant 0 : index
    %27 = vector.load %arg4[%c3, %c0_27, %c0_28] : memref<9x27x9xbf16, #tpu.memory_space<vmem>>, vector<1x27x9xbf16>
    %28 = vector.shape_cast %27 : vector<1x27x9xbf16> to vector<27x9xbf16>
    %cst_29 = arith.constant dense<0.000000e+00> : vector<27x128xf32>
    %29 = tpu.matmul %28, %26, %cst_29 {dimension_numbers = #tpu.dot_dimension_numbers<[1], [0], [0], [1], [0, 0, 1, 1], [], []>} : vector<27x9xbf16>, vector<9x128xbf16>, vector<27x128xf32> -> vector<27x128xf32>
    %30 = arith.addf %23, %29 : vector<27x128xf32>
    %c0_30 = arith.constant 0 : index
    %c0_31 = arith.constant 0 : index
    %c0_32 = arith.constant 0 : index
    %c11 = arith.constant 11 : index
    %31 = vector.load %arg2[%c0_30, %c0_31, %c0_32, %c11] : memref<1x1x12x256xf32, #tpu.memory_space<vmem>>, vector<1x1x9x128xf32>
    %32 = vector.shape_cast %31 : vector<1x1x9x128xf32> to vector<9x128xf32>
    %33 = arith.truncf %32 : vector<9x128xf32> to vector<9x128xbf16>
    %c4 = arith.constant 4 : index
    %c0_33 = arith.constant 0 : index
    %c0_34 = arith.constant 0 : index
    %34 = vector.load %arg4[%c4, %c0_33, %c0_34] : memref<9x27x9xbf16, #tpu.memory_space<vmem>>, vector<1x27x9xbf16>
    %35 = vector.shape_cast %34 : vector<1x27x9xbf16> to vector<27x9xbf16>
    %cst_35 = arith.constant dense<0.000000e+00> : vector<27x128xf32>
    %36 = tpu.matmul %35, %33, %cst_35 {dimension_numbers = #tpu.dot_dimension_numbers<[1], [0], [0], [1], [0, 0, 1, 1], [], []>} : vector<27x9xbf16>, vector<9x128xbf16>, vector<27x128xf32> -> vector<27x128xf32>
    %37 = arith.addf %30, %36 : vector<27x128xf32>
    %c0_36 = arith.constant 0 : index
    %c0_37 = arith.constant 0 : index
    %c0_38 = arith.constant 0 : index
    %c12 = arith.constant 12 : index
    %38 = vector.load %arg2[%c0_36, %c0_37, %c0_38, %c12] : memref<1x1x12x256xf32, #tpu.memory_space<vmem>>, vector<1x1x9x128xf32>
    %39 = vector.shape_cast %38 : vector<1x1x9x128xf32> to vector<9x128xf32>
    %40 = arith.truncf %39 : vector<9x128xf32> to vector<9x128xbf16>
    %c5 = arith.constant 5 : index
    %c0_39 = arith.constant 0 : index
    %c0_40 = arith.constant 0 : index
    %41 = vector.load %arg4[%c5, %c0_39, %c0_40] : memref<9x27x9xbf16, #tpu.memory_space<vmem>>, vector<1x27x9xbf16>
    %42 = vector.shape_cast %41 : vector<1x27x9xbf16> to vector<27x9xbf16>
    %cst_41 = arith.constant dense<0.000000e+00> : vector<27x128xf32>
    %43 = tpu.matmul %42, %40, %cst_41 {dimension_numbers = #tpu.dot_dimension_numbers<[1], [0], [0], [1], [0, 0, 1, 1], [], []>} : vector<27x9xbf16>, vector<9x128xbf16>, vector<27x128xf32> -> vector<27x128xf32>
    %44 = arith.addf %37, %43 : vector<27x128xf32>
    %c0_42 = arith.constant 0 : index
    %c0_43 = arith.constant 0 : index
    %c0_44 = arith.constant 0 : index
    %c20 = arith.constant 20 : index
    %45 = vector.load %arg2[%c0_42, %c0_43, %c0_44, %c20] : memref<1x1x12x256xf32, #tpu.memory_space<vmem>>, vector<1x1x9x128xf32>
    %46 = vector.shape_cast %45 : vector<1x1x9x128xf32> to vector<9x128xf32>
    %47 = arith.truncf %46 : vector<9x128xf32> to vector<9x128xbf16>
    %c6 = arith.constant 6 : index
    %c0_45 = arith.constant 0 : index
    %c0_46 = arith.constant 0 : index
    %48 = vector.load %arg4[%c6, %c0_45, %c0_46] : memref<9x27x9xbf16, #tpu.memory_space<vmem>>, vector<1x27x9xbf16>
    %49 = vector.shape_cast %48 : vector<1x27x9xbf16> to vector<27x9xbf16>
    %cst_47 = arith.constant dense<0.000000e+00> : vector<27x128xf32>
    %50 = tpu.matmul %49, %47, %cst_47 {dimension_numbers = #tpu.dot_dimension_numbers<[1], [0], [0], [1], [0, 0, 1, 1], [], []>} : vector<27x9xbf16>, vector<9x128xbf16>, vector<27x128xf32> -> vector<27x128xf32>
    %51 = arith.addf %44, %50 : vector<27x128xf32>
    %c0_48 = arith.constant 0 : index
    %c0_49 = arith.constant 0 : index
    %c0_50 = arith.constant 0 : index
    %c21 = arith.constant 21 : index
    %52 = vector.load %arg2[%c0_48, %c0_49, %c0_50, %c21] : memref<1x1x12x256xf32, #tpu.memory_space<vmem>>, vector<1x1x9x128xf32>
    %53 = vector.shape_cast %52 : vector<1x1x9x128xf32> to vector<9x128xf32>
    %54 = arith.truncf %53 : vector<9x128xf32> to vector<9x128xbf16>
    %c7 = arith.constant 7 : index
    %c0_51 = arith.constant 0 : index
    %c0_52 = arith.constant 0 : index
    %55 = vector.load %arg4[%c7, %c0_51, %c0_52] : memref<9x27x9xbf16, #tpu.memory_space<vmem>>, vector<1x27x9xbf16>
    %56 = vector.shape_cast %55 : vector<1x27x9xbf16> to vector<27x9xbf16>
    %cst_53 = arith.constant dense<0.000000e+00> : vector<27x128xf32>
    %57 = tpu.matmul %56, %54, %cst_53 {dimension_numbers = #tpu.dot_dimension_numbers<[1], [0], [0], [1], [0, 0, 1, 1], [], []>} : vector<27x9xbf16>, vector<9x128xbf16>, vector<27x128xf32> -> vector<27x128xf32>
    %58 = arith.addf %51, %57 : vector<27x128xf32>
    %c0_54 = arith.constant 0 : index
    %c0_55 = arith.constant 0 : index
    %c0_56 = arith.constant 0 : index
    %c22 = arith.constant 22 : index
    %59 = vector.load %arg2[%c0_54, %c0_55, %c0_56, %c22] : memref<1x1x12x256xf32, #tpu.memory_space<vmem>>, vector<1x1x9x128xf32>
    %60 = vector.shape_cast %59 : vector<1x1x9x128xf32> to vector<9x128xf32>
    %61 = arith.truncf %60 : vector<9x128xf32> to vector<9x128xbf16>
    %c8 = arith.constant 8 : index
    %c0_57 = arith.constant 0 : index
    %c0_58 = arith.constant 0 : index
    %62 = vector.load %arg4[%c8, %c0_57, %c0_58] : memref<9x27x9xbf16, #tpu.memory_space<vmem>>, vector<1x27x9xbf16>
    %63 = vector.shape_cast %62 : vector<1x27x9xbf16> to vector<27x9xbf16>
    %cst_59 = arith.constant dense<0.000000e+00> : vector<27x128xf32>
    %64 = tpu.matmul %63, %61, %cst_59 {dimension_numbers = #tpu.dot_dimension_numbers<[1], [0], [0], [1], [0, 0, 1, 1], [], []>} : vector<27x9xbf16>, vector<9x128xbf16>, vector<27x128xf32> -> vector<27x128xf32>
    %65 = arith.addf %58, %64 : vector<27x128xf32>
    %c0_60 = arith.constant 0 : index
    %c0_61 = arith.constant 0 : index
    %66 = vector.load %arg5[%c0_60, %c0_61] : memref<27x1xf32, #tpu.memory_space<vmem>>, vector<27x1xf32>
    %67 = vector.broadcast %66 : vector<27x1xf32> to vector<27x128xf32>
    %68 = arith.addf %65, %67 : vector<27x128xf32>
    %c0_62 = arith.constant 0 : index
    %c0_63 = arith.constant 0 : index
    %c0_64 = arith.constant 0 : index
    %c11_65 = arith.constant 11 : index
    %69 = vector.load %arg2[%c0_62, %c0_63, %c0_64, %c11_65] : memref<1x1x12x256xf32, #tpu.memory_space<vmem>>, vector<1x1x12x128xf32>
    %70 = vector.shape_cast %69 : vector<1x1x12x128xf32> to vector<12x128xf32>
    %71 = vector.extract_strided_slice %68 {offsets = [0, 0], sizes = [9, 128], strides = [1, 1]} : vector<27x128xf32> to vector<9x128xf32>
    %72 = vector.extract_strided_slice %68 {offsets = [9, 0], sizes = [9, 128], strides = [1, 1]} : vector<27x128xf32> to vector<9x128xf32>
    %cst_66 = arith.constant -1.381550e+01 : f32
    %cst_67 = arith.constant 1.381550e+01 : f32
    %73 = vector.broadcast %cst_66 : f32 to vector<9x128xf32>
    %74 = arith.maximumf %73, %72 : vector<9x128xf32>
    %75 = vector.broadcast %cst_67 : f32 to vector<9x128xf32>
    %76 = arith.minimumf %75, %74 : vector<9x128xf32>
    %cst_68 = arith.constant 5.000000e-01 : f32
    %77 = vector.broadcast %cst_68 : f32 to vector<9x128xf32>
    %78 = arith.mulf %77, %76 : vector<9x128xf32>
    %79 = math.exp %78 : vector<9x128xf32>
    %80 = vector.extract_strided_slice %68 {offsets = [18, 0], sizes = [9, 128], strides = [1, 1]} : vector<27x128xf32> to vector<9x128xf32>
    %81 = vector.extract_strided_slice %70 {offsets = [0, 0], sizes = [3, 128], strides = [1, 1]} : vector<12x128xf32> to vector<3x128xf32>
    %c0_69 = arith.constant 0 : index
    %c0_70 = arith.constant 0 : index
    %82 = vector.load %arg6[%c0_69, %c0_70] : memref<3x3xf32, #tpu.memory_space<vmem>>, vector<3x1xf32>
    %c0_71 = arith.constant 0 : index
    %c1_72 = arith.constant 1 : index
    %83 = vector.load %arg6[%c0_71, %c1_72] : memref<3x3xf32, #tpu.memory_space<vmem>>, vector<3x1xf32>
    %c0_73 = arith.constant 0 : index
    %c2_74 = arith.constant 2 : index
    %84 = vector.load %arg6[%c0_73, %c2_74] : memref<3x3xf32, #tpu.memory_space<vmem>>, vector<3x1xf32>
    %c0_75 = arith.constant 0 : index
    %c0_76 = arith.constant 0 : index
    %85 = vector.load %arg7[%c0_75, %c0_76] : memref<9x2xf32, #tpu.memory_space<vmem>>, vector<3x1xf32>
    %c0_77 = arith.constant 0 : index
    %c1_78 = arith.constant 1 : index
    %86 = vector.load %arg7[%c0_77, %c1_78] : memref<9x2xf32, #tpu.memory_space<vmem>>, vector<3x1xf32>
    %87 = vector.extract_strided_slice %81 {offsets = [2, 0], sizes = [1, 128], strides = [1, 1]} : vector<3x128xf32> to vector<1x128xf32>
    %88 = vector.extract_strided_slice %81 {offsets = [0, 0], sizes = [2, 128], strides = [1, 1]} : vector<3x128xf32> to vector<2x128xf32>
    %89 = tpu.concatenate %87, %88 in 0 : vector<1x128xf32>, vector<2x128xf32> -> vector<3x128xf32>
    %90 = vector.extract_strided_slice %81 {offsets = [1, 0], sizes = [2, 128], strides = [1, 1]} : vector<3x128xf32> to vector<2x128xf32>
    %91 = vector.extract_strided_slice %81 {offsets = [0, 0], sizes = [1, 128], strides = [1, 1]} : vector<3x128xf32> to vector<1x128xf32>
    %92 = tpu.concatenate %90, %91 in 0 : vector<2x128xf32>, vector<1x128xf32> -> vector<3x128xf32>
    %93 = vector.extract_strided_slice %84 {offsets = [2, 0], sizes = [1, 1], strides = [1, 1]} : vector<3x1xf32> to vector<1x1xf32>
    %94 = vector.extract_strided_slice %84 {offsets = [0, 0], sizes = [2, 1], strides = [1, 1]} : vector<3x1xf32> to vector<2x1xf32>
    %95 = tpu.concatenate %93, %94 in 0 : vector<1x1xf32>, vector<2x1xf32> -> vector<3x1xf32>
    %96 = vector.broadcast %95 : vector<3x1xf32> to vector<3x128xf32>
    %97 = arith.mulf %89, %96 : vector<3x128xf32>
    %98 = vector.broadcast %85 : vector<3x1xf32> to vector<3x128xf32>
    %99 = arith.mulf %98, %97 : vector<3x128xf32>
    %100 = vector.broadcast %82 : vector<3x1xf32> to vector<3x128xf32>
    %101 = arith.addf %100, %99 : vector<3x128xf32>
    %102 = vector.broadcast %95 : vector<3x1xf32> to vector<3x128xf32>
    %103 = arith.mulf %92, %102 : vector<3x128xf32>
    %104 = vector.broadcast %84 : vector<3x1xf32> to vector<3x128xf32>
    %105 = arith.mulf %89, %104 : vector<3x128xf32>
    %106 = arith.addf %103, %105 : vector<3x128xf32>
    %107 = vector.broadcast %86 : vector<3x1xf32> to vector<3x128xf32>
    %108 = arith.mulf %107, %106 : vector<3x128xf32>
    %109 = arith.addf %101, %108 : vector<3x128xf32>
    %110 = arith.subf %81, %109 : vector<3x128xf32>
    %111 = vector.broadcast %83 : vector<3x1xf32> to vector<3x128xf32>
    %112 = arith.mulf %110, %111 : vector<3x128xf32>
    %cst_79 = arith.constant 0.00196078443 : f32
    %113 = vector.broadcast %cst_79 : f32 to vector<3x1xf32>
    %114 = arith.mulf %113, %83 : vector<3x1xf32>
    %115 = vector.broadcast %114 : vector<3x1xf32> to vector<3x128xf32>
    %116 = arith.addf %112, %115 : vector<3x128xf32>
    %cst_80 = arith.constant 5.000000e-01 : f32
    %117 = vector.broadcast %cst_80 : f32 to vector<3x128xf32>
    %118 = arith.mulf %117, %116 : vector<3x128xf32>
    %119 = math.tanh %118 : vector<3x128xf32>
    %120 = vector.broadcast %114 : vector<3x1xf32> to vector<3x128xf32>
    %121 = arith.subf %112, %120 : vector<3x128xf32>
    %cst_81 = arith.constant 5.000000e-01 : f32
    %122 = vector.broadcast %cst_81 : f32 to vector<3x128xf32>
    %123 = arith.mulf %122, %121 : vector<3x128xf32>
    %124 = math.tanh %123 : vector<3x128xf32>
    %125 = arith.subf %119, %124 : vector<3x128xf32>
    %cst_82 = arith.constant 5.000000e-01 : f32
    %126 = vector.broadcast %cst_82 : f32 to vector<3x128xf32>
    %127 = arith.mulf %126, %125 : vector<3x128xf32>
    %cst_83 = arith.constant 1.52587891E-5 : f32
    %cst_84 = arith.constant 1.000000e+00 : f32
    %128 = vector.broadcast %cst_83 : f32 to vector<3x128xf32>
    %129 = arith.maximumf %128, %127 : vector<3x128xf32>
    %130 = vector.broadcast %cst_84 : f32 to vector<3x128xf32>
    %131 = arith.minimumf %130, %129 : vector<3x128xf32>
    %132 = math.log %131 : vector<3x128xf32>
    %cst_85 = arith.constant 2.000000e+00 : f32
    %133 = math.log %cst_85 : f32
    %134 = vector.broadcast %133 : f32 to vector<3x128xf32>
    %135 = arith.divf %132, %134 : vector<3x128xf32>
    %cst_86 = arith.constant 0.000000e+00 : f32
    %136 = vector.broadcast %cst_86 : f32 to vector<3x128xf32>
    %137 = arith.subf %136, %135 : vector<3x128xf32>
    %138 = vector.broadcast %1 : vector<1x128xf32> to vector<3x128xf32>
    %139 = arith.mulf %137, %138 : vector<3x128xf32>
    %140 = vector.shape_cast %139 : vector<3x128xf32> to vector<1x3x128xf32>
    %cst_87 = arith.constant dense<0.000000e+00> : vector<1xf32>
    %141 = vector.multi_reduction <add>, %140, %cst_87 [1, 2] : vector<1x3x128xf32> to vector<1xf32>
    %142 = vector.shape_cast %141 : vector<1xf32> to vector<1x1x1xf32>
    %143 = vector.extract %142[0, 0, 0] : f32 from vector<1x1x1xf32>
    %144 = vector.extract_strided_slice %70 {offsets = [3, 0], sizes = [9, 128], strides = [1, 1]} : vector<12x128xf32> to vector<9x128xf32>
    %c0_88 = arith.constant 0 : index
    %c0_89 = arith.constant 0 : index
    %145 = vector.load %arg7[%c0_88, %c0_89] : memref<9x2xf32, #tpu.memory_space<vmem>>, vector<9x1xf32>
    %c0_90 = arith.constant 0 : index
    %c1_91 = arith.constant 1 : index
    %146 = vector.load %arg7[%c0_90, %c1_91] : memref<9x2xf32, #tpu.memory_space<vmem>>, vector<9x1xf32>
    %147 = vector.extract_strided_slice %144 {offsets = [8, 0], sizes = [1, 128], strides = [1, 1]} : vector<9x128xf32> to vector<1x128xf32>
    %148 = vector.extract_strided_slice %144 {offsets = [0, 0], sizes = [8, 128], strides = [1, 1]} : vector<9x128xf32> to vector<8x128xf32>
    %149 = tpu.concatenate %147, %148 in 0 : vector<1x128xf32>, vector<8x128xf32> -> vector<9x128xf32>
    %150 = vector.extract_strided_slice %144 {offsets = [7, 0], sizes = [2, 128], strides = [1, 1]} : vector<9x128xf32> to vector<2x128xf32>
    %151 = vector.extract_strided_slice %144 {offsets = [0, 0], sizes = [7, 128], strides = [1, 1]} : vector<9x128xf32> to vector<7x128xf32>
    %152 = tpu.concatenate %150, %151 in 0 : vector<2x128xf32>, vector<7x128xf32> -> vector<9x128xf32>
    %153 = vector.extract_strided_slice %80 {offsets = [8, 0], sizes = [1, 128], strides = [1, 1]} : vector<9x128xf32> to vector<1x128xf32>
    %154 = vector.extract_strided_slice %80 {offsets = [0, 0], sizes = [8, 128], strides = [1, 1]} : vector<9x128xf32> to vector<8x128xf32>
    %155 = tpu.concatenate %153, %154 in 0 : vector<1x128xf32>, vector<8x128xf32> -> vector<9x128xf32>
    %156 = arith.mulf %149, %155 : vector<9x128xf32>
    %157 = vector.broadcast %145 : vector<9x1xf32> to vector<9x128xf32>
    %158 = arith.mulf %157, %156 : vector<9x128xf32>
    %159 = arith.addf %71, %158 : vector<9x128xf32>
    %160 = arith.mulf %152, %155 : vector<9x128xf32>
    %161 = arith.mulf %149, %80 : vector<9x128xf32>
    %162 = arith.addf %160, %161 : vector<9x128xf32>
    %163 = vector.broadcast %146 : vector<9x1xf32> to vector<9x128xf32>
    %164 = arith.mulf %163, %162 : vector<9x128xf32>
    %165 = arith.addf %159, %164 : vector<9x128xf32>
    %166 = arith.subf %144, %165 : vector<9x128xf32>
    %167 = arith.mulf %166, %79 : vector<9x128xf32>
    %cst_92 = arith.constant 0.00196078443 : f32
    %168 = vector.broadcast %cst_92 : f32 to vector<9x128xf32>
    %169 = arith.mulf %168, %79 : vector<9x128xf32>
    %170 = arith.addf %167, %169 : vector<9x128xf32>
    %cst_93 = arith.constant 5.000000e-01 : f32
    %171 = vector.broadcast %cst_93 : f32 to vector<9x128xf32>
    %172 = arith.mulf %171, %170 : vector<9x128xf32>
    %173 = math.tanh %172 : vector<9x128xf32>
    %174 = arith.subf %167, %169 : vector<9x128xf32>
    %cst_94 = arith.constant 5.000000e-01 : f32
    %175 = vector.broadcast %cst_94 : f32 to vector<9x128xf32>
    %176 = arith.mulf %175, %174 : vector<9x128xf32>
    %177 = math.tanh %176 : vector<9x128xf32>
    %178 = arith.subf %173, %177 : vector<9x128xf32>
    %cst_95 = arith.constant 5.000000e-01 : f32
    %179 = vector.broadcast %cst_95 : f32 to vector<9x128xf32>
    %180 = arith.mulf %179, %178 : vector<9x128xf32>
    %cst_96 = arith.constant 1.52587891E-5 : f32
    %cst_97 = arith.constant 1.000000e+00 : f32
    %181 = vector.broadcast %cst_96 : f32 to vector<9x128xf32>
    %182 = arith.maximumf %181, %180 : vector<9x128xf32>
    %183 = vector.broadcast %cst_97 : f32 to vector<9x128xf32>
    %184 = arith.minimumf %183, %182 : vector<9x128xf32>
    %185 = math.log %184 : vector<9x128xf32>
    %cst_98 = arith.constant 2.000000e+00 : f32
    %186 = math.log %cst_98 : f32
    %187 = vector.broadcast %186 : f32 to vector<9x128xf32>
    %188 = arith.divf %185, %187 : vector<9x128xf32>
    %cst_99 = arith.constant 0.000000e+00 : f32
    %189 = vector.broadcast %cst_99 : f32 to vector<9x128xf32>
    %190 = arith.subf %189, %188 : vector<9x128xf32>
    %191 = vector.broadcast %1 : vector<1x128xf32> to vector<9x128xf32>
    %192 = arith.mulf %190, %191 : vector<9x128xf32>
    %193 = vector.shape_cast %192 : vector<9x128xf32> to vector<1x9x128xf32>
    %cst_100 = arith.constant dense<0.000000e+00> : vector<1xf32>
    %194 = vector.multi_reduction <add>, %193, %cst_100 [1, 2] : vector<1x9x128xf32> to vector<1xf32>
    %195 = vector.shape_cast %194 : vector<1xf32> to vector<1x1x1xf32>
    %196 = vector.extract %195[0, 0, 0] : f32 from vector<1x1x1xf32>
    %197 = arith.addf %143, %196 : f32
    %198 = vector.broadcast %197 : f32 to vector<1x1xf32>
    %c0_101 = arith.constant 0 : index
    %c0_102 = arith.constant 0 : index
    %c0_103 = arith.constant 0 : index
    %c0_104 = arith.constant 0 : index
    %199 = vector.load %arg8[%c0_101, %c0_102, %c0_103, %c0_104] : memref<1x1x1x1xf32, #tpu.memory_space<vmem>>, vector<1x1x1x1xf32>
    %200 = vector.shape_cast %199 : vector<1x1x1x1xf32> to vector<1x1xf32>
    %201 = vector.shape_cast %198 : vector<1x1xf32> to vector<1x1x1x1xf32>
    tpu.vector_store %arg8[%c0_101, %c0_102, %c0_103, %c0_104], %201 {strides = array<i32>} : memref<1x1x1x1xf32, #tpu.memory_space<vmem>>, vector<1x1x1x1xf32>,
    return
  }
  func.func @transform_0(%arg0: i32, %arg1: i32) -> (i32, i32, i32, i32) {
    %c0_i32 = arith.constant 0 : i32
    %c0_i32_0 = arith.constant 0 : i32
    %c0_i32_1 = arith.constant 0 : i32
    return %arg0, %arg1, %c0_i32, %c0_i32_0 : i32, i32, i32, i32
  }
  func.func @transform_1(%arg0: i32, %arg1: i32) -> (i32, i32, i32) {
    %c0_i32 = arith.constant 0 : i32
    %c0_i32_0 = arith.constant 0 : i32
    %c0_i32_1 = arith.constant 0 : i32
    return %arg1, %c0_i32, %c0_i32_0 : i32, i32, i32
  }
  func.func @transform_2(%arg0: i32, %arg1: i32) -> (i32, i32, i32) {
    %c0_i32 = arith.constant 0 : i32
    %c0_i32_0 = arith.constant 0 : i32
    %c0_i32_1 = arith.constant 0 : i32
    %c0_i32_2 = arith.constant 0 : i32
    return %c0_i32, %c0_i32_0, %c0_i32_1 : i32, i32, i32
  }
  func.func @transform_3(%arg0: i32, %arg1: i32) -> (i32, i32) {
    %c0_i32 = arith.constant 0 : i32
    %c0_i32_0 = arith.constant 0 : i32
    %c0_i32_1 = arith.constant 0 : i32
    return %c0_i32, %c0_i32_0 : i32, i32
  }
  func.func @transform_4(%arg0: i32, %arg1: i32) -> (i32, i32) {
    %c0_i32 = arith.constant 0 : i32
    %c0_i32_0 = arith.constant 0 : i32
    %c0_i32_1 = arith.constant 0 : i32
    return %c0_i32, %c0_i32_0 : i32, i32
  }
  func.func @transform_5(%arg0: i32, %arg1: i32) -> (i32, i32) {
    %c0_i32 = arith.constant 0 : i32
    %c0_i32_0 = arith.constant 0 : i32
    %c0_i32_1 = arith.constant 0 : i32
    return %c0_i32, %c0_i32_0 : i32, i32
  }
  func.func @transform_6(%arg0: i32, %arg1: i32) -> (i32, i32, i32, i32) {
    %c0_i32 = arith.constant 0 : i32
    %c0_i32_0 = arith.constant 0 : i32
    %c0_i32_1 = arith.constant 0 : i32
    return %arg0, %arg1, %c0_i32, %c0_i32_0 : i32, i32, i32, i32
  }
}

</mosaic_0001>

<bundles_post_ra>
// kernel: tpu_custom_call.1
= control target key start
LH: loop header
LB: loop body
LE: loop exit
PB: predicated region body
PF: predicated region fallthrough
CT: control target
= control target key end

     0   :  { %s1962_s21 = smov 0   ;;  %s1964_s22 = smov 0   ;;  %s2250_s0 = inlined_call_operand.vmem [shape: f32[2,1,12,256], index: 0, kind: input, shape index: {}]   ;;  %s2251_s1 = inlined_call_operand.vmem [shape: f32[1,1,128], index: 1, kind: input, shape index: {}]   ;;  %s2252_s2 = inlined_call_operand.vmem [shape: bf16[9,27,9], index: 2, kind: input, shape index: {}]   ;;  %s2253_s3 = inlined_call_operand.vmem [shape: f32[27,1], index: 3, kind: input, shape index: {}]   ;;  %s2254_s4 = inlined_call_operand.vmem [shape: f32[3,3], index: 4, kind: input, shape index: {}]   ;;  %s2255_s5 = inlined_call_operand.vmem [shape: f32[9,2], index: 5, kind: input, shape index: {}]   ;;  %s2256_s6 = inlined_call_operand.vmem [shape: f32[2,1,1,1], index: 6, kind: output, shape index: {}]  }
   0x1   :  { %s1966_s23 = smov 0  }
   0x2 LB: > { %s28_s24 = sadd.s32 1, %s1908_s22  ;;  %p1590_p0 = scmp.ge.s32.totalorder %s1912_s23, 1  ;;  %s1912_s23 = sphi %s1966_s23, %s16_s23   ;;  %s1908_s22 = sphi %s1964_s22, %s2258_s22   ;;  %s1904_s21 = sphi %s1962_s21, %s2257_s21  }
   0x3   : > { %p30_p1 = scmp.ge.s32.totalorder %s28_s24, 2  ;;  %p240_p2 = scmp.lt.s32.totalorder %s1912_s23, 3 }
   0x5   : > { %s2260_s24 = smov (%p30_p1, %s28_s24), 0  ;;  %p241_p3 = pnand %p1590_p0, %p240_p2 }
   0x6   : > { %p278_p4 = scmp.lt.s32.totalorder (!%p241_p3), %s1904_s21, 1  ;;  %v1832_v0 = vld [vmem:[%s2252_s2 + $0x10] sm:$0xff] (!%p241_p3)   ;;  %v1833_v1 = vld [vmem:[%s2252_s2 + $0x40] sm:$0xff] (!%p241_p3)   ;;  %vm331_vm0 = vcmask (!%p241_p3), 72704   ;;  %s1914_s9 = smov (!%p241_p3), 127   ;;  %v1922_v10 = vmov (!%p241_p3), 0  }
   0x7   : > { %244 = sbr.rel (%p241_p3) target bundleno = 1168 (0x490), region = 44  ;;  %1696 = vmatprep.mubr.msk.bf16.mxu1 (!%p241_p3), %vm331_vm0, %v1832_v0  ;;  %1720 = vmatprep.mubr.msk.bf16.mxu0 (!%p241_p3), %vm331_vm0, %v1833_v1  ;;  %s1915_s10 = smov (!%p241_p3), 117   ;;  %v1046_v8 = vld [vmem:[%s2253_s3 + $0x18] sm:$0x7] (!%p241_p3)  ;;  %v1045_v9 = vld [vmem:[%s2253_s3 + $0x10] sm:$0xff] (!%p241_p3)  ;;  %v2019_v11 = vld [vmem:[%s2255_s5] sm:$0xff] (!%p241_p3) }
   0x8   : > { %s1916_s11 = smov (!%p241_p3), 116   ;;  %s1917_s12 = smov (!%p241_p3), 108   ;;  %1822 = vset.pattern.permute.xlu1 (!%p241_p3), %v1922_v10  ;;  %1821 = vset.pattern.permute.xlu0 (!%p241_p3), %v1922_v10  ;;  %v2024_v12 = vld [vmem:[%s2255_s5 + $0x8] sm:$0x1] (!%p241_p3)  ;;  %vm338_vm1 = vcmask (!%p241_p3), 1043456   ;;  %vm339_vm2 = vcmask (!%p241_p3), 1044480  }
   0x9   : > { %s1918_s13 = smov (!%p241_p3), 126   ;;  %s1919_s14 = smov (!%p241_p3), 107   ;;  %v1923_v15 = vmov (!%p241_p3), 65535   ;;  %vm329_vm3 = vcmask (!%p241_p3), 1039360   ;;  %vm647_vm4 = vcmask (!%p241_p3), 957440   ;;  %vm730_vm5 = vcmask (!%p241_p3), 949248  }
   0xa   : > { %s1920_s15 = smov (!%p241_p3), 118   ;;  %s1921_s16 = smov (!%p241_p3), 106   ;;  %v340_v16 = vsel (!%p241_p3), %vm338_vm1, 4294967295, %v1923_v15  ;;  %v1834_v27 = vld [vmem:[%s2252_s2 + $0x18] sm:$0x3f] (!%p241_p3)   ;;  %vm813_vm6 = vcmask (!%p241_p3), 883712  }
   0xb   : > { %v2029_v17 = vsel (!%p241_p3), %vm339_vm2, %v340_v16, 0  ;;  %v1835_v28 = vld [vmem:[%s2252_s2 + $0x48] sm:$0x3f] (!%p241_p3)   ;;  %v1836_v31 = vld [vmem:[%s2252_s2] sm:$0xff] (!%p241_p3)   ;;  %v1837_v32 = vld [vmem:[%s2252_s2 + $0x50] sm:$0xff] (!%p241_p3)   ;;  %vm481_vm7 = vcmask (!%p241_p3), 1031168  }
   0xc   : > { %vm896_vm8 = vcmask (!%p241_p3), 875520   ;;  %v1838_v41 = vld [vmem:[%s2252_s2 + $0x8] sm:$0x3f] (!%p241_p3)   ;;  %v1839_v42 = vld [vmem:[%s2252_s2 + $0x58] sm:$0x3f] (!%p241_p3)   ;;  %v1840_v46 = vld [vmem:[%s2252_s2 + $0x20] sm:$0xff] (!%p241_p3)  }
   0xd   : > { %v1841_v47 = vld [vmem:[%s2252_s2 + $0x60] sm:$0xff] (!%p241_p3)   ;;  %vm564_vm9 = vcmask (!%p241_p3), 965632   ;;  %vm979_vm10 = vcmask (!%p241_p3), 867328   ;;  %v1842_v55 = vld [vmem:[%s2252_s2 + $0x28] sm:$0x3f] (!%p241_p3)   ;;  %v1844_v58 = vld [vmem:[%s2252_s2 + $0x30] sm:$0xff] (!%p241_p3)  }
   0xe   : > { %s2262_s21 = smov (!%p278_p4, %s1904_s21), 1  ;;  %v1843_v56 = vld [vmem:[%s2252_s2 + $0x68] sm:$0x3f]   ;;  %v1845_v59 = vld [vmem:[%s2252_s2 + $0x70] sm:$0xff]   ;;  %v1846_v61 = vld [vmem:[%s2252_s2 + $0x38] sm:$0x3f]  }
   0xf   : > { %s1666_s25 = sshll.u32 %s2262_s21, 5  ;;  %v1847_v62 = vld [vmem:[%s2252_s2 + $0x78] sm:$0x3f]   ;;  %v1848_v63 = vld [vmem:[%s2252_s2 + $0x80] sm:$0xff]   ;;  %v1849_v0 = vld [vmem:[%s2252_s2 + $0x88] sm:$0x3f]  }
  0x10   : > { %s1992_s8 = scalar_lea.vmem %s2250_s0, %s1666_s25  ;;  %v1924_v1 = vmov 1   ;;  %vm1234_vm11 = vcmask 1045504   ;;  %vm1095_vm12 = vcmask 1040384   ;;  %vm1245_vm13 = vcmask 1046528   ;;  %s1925_s25 = smov 11  }
  0x11   : > { %v1995_v2 = vld [vmem:[%s1992_s8] sm:$0xff]  ;;  %v299_v3 = vld [vmem:[%s1992_s8 + $0x10] sm:$0x1]  ;;  %v1999_v4 = vld [vmem:[%s1992_s8 + $0x8] sm:$0xff]  ;;  %vm1106_vm14 = vcmask 1041408   ;;  %vm1215_vm15 = vcmask 1042432  }
  0x12   : > { %v300_v5 = vpack.c.bf16 %v299_v3, %v1995_v2  ;;  %v306_v6 = vld [vmem:[%s1992_s8 + $0x18] sm:$0x1] }
  0x13   : > { %v307_v7 = vpack.c.bf16 %v306_v6, %v1999_v4 }
  0x14   : > { %325 = vrot.lane.b32.xlu1 %v300_v5, %s1914_s9  ;;  %643 = vrot.lane.b32.xlu0 %v300_v5, %s1915_s10  ;;  %v411_v24 = vand.u32 %v2029_v17, %v300_v5 }
  0x18   : > { %327 = vrot.lane.b32.xlu1 %v307_v7, %s1914_s9  ;;  %645 = vrot.lane.b32.xlu0 %v307_v7, %s1915_s10 }
  0x1c   : > { %728 = vrot.lane.b32.xlu1 %v307_v7, %s1916_s11  ;;  %726 = vrot.lane.b32.xlu0 %v300_v5, %s1916_s11 }
  0x20   : > { %811 = vrot.lane.b32.xlu1 %v307_v7, %s1917_s12  ;;  %809 = vrot.lane.b32.xlu0 %v300_v5, %s1917_s12 }
  0x24   : > { %479 = vrot.lane.b32.xlu1 %v307_v7, %s1918_s13  ;;  %477 = vrot.lane.b32.xlu0 %v300_v5, %s1918_s13 }
  0x28   : > { %894 = vrot.lane.b32.xlu1 %v307_v7, %s1919_s14  ;;  %892 = vrot.lane.b32.xlu0 %v300_v5, %s1919_s14 }
  0x2c   : > { %562 = vrot.lane.b32.xlu1 %v307_v7, %s1920_s15  ;;  %560 = vrot.lane.b32.xlu0 %v300_v5, %s1920_s15 }
  0x30   : > { %977 = vrot.lane.b32.xlu1 %v307_v7, %s1921_s16  ;;  %975 = vrot.lane.b32.xlu0 %v300_v5, %s1921_s16  ;;  %s295_s16 = scalar_lea.vmem %s2256_s6, %s2262_s21 }
  0x34   : > { %1064 = vperm.xlu1 %1822, %v1046_v8   ;;  %1059 = vperm.xlu0 %1821, %v1045_v9  }
  0x38   : > { %1278 = vperm.xlu1 %1822, %v2019_v11   ;;  %1283 = vperm.xlu0 %1821, %v2024_v12  }
  0x3c   : > { %1823 = vset.pattern.permute.xlu1 %v1924_v1  ;;  %1824 = vset.pattern.permute.xlu0 %v1924_v1 }
  0x3d   : > { %1329 = vperm.xlu1 %1823, %v2019_v11   ;;  %1333 = vperm.xlu0 %1824, %v2024_v12  }
  0x41   : > { %1825 = vset.pattern.permute.xlu0 %v1922_v10  ;;  %1826 = vset.pattern.permute.xlu1 %v1922_v10 }
  0x86   : > { %v326_v13 = vpop.permute.xlu1 %325  ;;  %v644_v14 = vpop.permute.xlu0 %643 }
  0x8a   : > { %v328_v18 = vpop.permute.xlu1 %327  ;;  %v646_v19 = vpop.permute.xlu0 %645 }
  0x8b   : > { %v330_v20 = vsel %vm329_vm3, %v326_v13, %v328_v18  ;;  %v648_v21 = vsel %vm647_vm4, %v644_v14, %v646_v19 }
  0x8c   : > { %v343_v22 = vand.u32 %v2029_v17, %v330_v20  ;;  %v656_v23 = vand.u32 %v648_v21, %v2029_v17 }
  0x8e   : > { %1694 = vmatprep.subr.bf16.mxu1 %v343_v22  ;;  %v729_v25 = vpop.permute.xlu1 %728  ;;  %1718 = vmatprep.subr.bf16.mxu0 %v656_v23  ;;  %v727_v26 = vpop.permute.xlu0 %726 }
  0x8f   : > { %v731_v29 = vsel %vm730_vm5, %v727_v26, %v729_v25  ;;  %1695 = vmatpush3.bf16.msra.mxu1 %v343_v22  ;;  %1719 = vmatpush3.bf16.msra.mxu0 %v656_v23 }
  0x90   : > { %v739_v30 = vand.u32 %v731_v29, %v2029_v17  ;;  %1700 = vmatprep.subr.bf16.mxu1 %v411_v24  ;;  %v1043_v29 = vld [vmem:[%s2253_s3] sm:$0xff] }
  0x92   : > { %1697 = vmatmul.mubr.msk.bf16.vlgmr.msra.gmra.mrb[0].mxu1 %vm331_vm0, %v1834_v27  ;;  %1721 = vmatmul.mubr.msk.bf16.vlgmr.msra.gmra.mrb[0].mxu0 %vm331_vm0, %v1835_v28  ;;  %v812_v33 = vpop.permute.xlu1 %811  ;;  %v810_v34 = vpop.permute.xlu0 %809  ;;  %v1044_v28 = vld [vmem:[%s2253_s3 + $0x8] sm:$0xff] }
  0x93   : > { %1724 = vmatprep.subr.bf16.mxu0 %v739_v30  ;;  %v814_v35 = vsel %vm813_vm6, %v810_v34, %v812_v33  ;;  %1701 = vmatpush3.bf16.msra.mxu1 %v411_v24  ;;  %v2133_v33 = vld [vmem:[%s1992_s8 + $0x10] sm:$0xf]  ;;  %v2136_v34 = vld [vmem:[%s1992_s8 + $0x18] sm:$0xf] }
  0x94   : > { %1725 = vmatpush3.bf16.msra.mxu0 %v739_v30  ;;  %v822_v36 = vand.u32 %v814_v35, %v2029_v17  ;;  %1702 = vmatprep.mubr.msk.bf16.mxu1 %vm331_vm0, %v1836_v31  ;;  %v1926_v30 = vmov 2  }
  0x95   : > { %1726 = vmatprep.mubr.msk.bf16.mxu0 %vm331_vm0, %v1837_v32 }
  0x96   : > { %1730 = vmatprep.subr.bf16.mxu0 %v822_v36  ;;  %v480_v37 = vpop.permute.xlu1 %479  ;;  %v478_v38 = vpop.permute.xlu0 %477 }
  0x97   : > { %v482_v39 = vsel %vm481_vm7, %v478_v38, %v480_v37  ;;  %v1237_v37 = vrot.slane %v2136_v34, 2  ;;  %v1087_v38 = vrot.slane %v1995_v2, 2 }
  0x98   : > { %v490_v40 = vand.u32 %v482_v39, %v2029_v17  ;;  %v1088_v39 = vrot.slane %v1999_v4, 2 }
  0x9a   : > { %v895_v43 = vpop.permute.xlu1 %894  ;;  %v893_v44 = vpop.permute.xlu0 %892  ;;  %1706 = vmatprep.subr.bf16.mxu1 %v490_v40 }
  0x9b   : > { %v897_v45 = vsel %vm896_vm8, %v893_v44, %v895_v43  ;;  %v1230_v43 = vrot.slane %v2133_v33, 3  ;;  %v1231_v44 = vrot.slane %v2136_v34, 3 }
  0x9c   : > { %v905_v48 = vand.u32 %v897_v45, %v2029_v17  ;;  %v1246_v45 = vrot.slane %v2133_v33, 1 }
  0x9e   : > { %1703 = vmatmul.mubr.msk.bf16.vlgmr.msra.gmra.mrb[0].mxu1 %vm331_vm0, %v1838_v41  ;;  %1727 = vmatmul.mubr.msk.bf16.vlgmr.msra.gmra.mrb[0].mxu0 %vm331_vm0, %v1839_v42  ;;  %v563_v49 = vpop.permute.xlu1 %562  ;;  %v561_v50 = vpop.permute.xlu0 %560  ;;  %v1098_v41 = vrot.slane %v1995_v2, 1  ;;  %v1099_v42 = vrot.slane %v1999_v4, 1 }
  0x9f   : > { %1731 = vmatpush3.bf16.msra.mxu0 %v822_v36  ;;  %1707 = vmatpush3.bf16.msra.mxu1 %v490_v40  ;;  %v565_v51 = vsel %vm564_vm9, %v561_v50, %v563_v49  ;;  %v1235_v36 = vrot.slane %v2133_v33, 2 }
  0xa0   : > { %1708 = vmatprep.mubr.msk.bf16.mxu1 %vm331_vm0, %v1840_v46  ;;  %1732 = vmatprep.mubr.msk.bf16.mxu0 %vm331_vm0, %v1841_v47  ;;  %v573_v52 = vand.u32 %v565_v51, %v2029_v17  ;;  %v1248_v46 = vrot.slane %v2136_v34, 1  ;;  %v1247_v49 = vsel %vm1245_vm13, %v1098_v41, %v1246_v45 }
  0xa1   : > { %1736 = vmatprep.subr.bf16.mxu0 %v905_v48  ;;  %v1236_v47 = vsel %vm1234_vm11, %v1087_v38, %v1235_v36 }
  0xa2   : > { %1712 = vmatprep.subr.bf16.mxu1 %v573_v52  ;;  %v978_v53 = vpop.permute.xlu1 %977  ;;  %v976_v54 = vpop.permute.xlu0 %975  ;;  %v1249_v50 = vsel %vm1245_vm13, %v1099_v42, %v1248_v46 }
  0xa3   : > { %v980_v57 = vsel %vm979_vm10, %v976_v54, %v978_v53  ;;  %v1243_v54 = vsel %vm1095_vm12, %v1230_v43, %v1236_v47  ;;  %v1084_v43 = vld [vmem:[%s2255_s5] sm:$0x7] }
  0xa4   : > { %v988_v60 = vand.u32 %v980_v57, %v2029_v17  ;;  %v1254_v57 = vsel %vm1106_vm14, %v1235_v36, %v1247_v49 }
  0xaa   : > { %1709 = vmatmul.mubr.msk.bf16.vlgmr.msra.gmra.mrb[0].mxu1 %vm331_vm0, %v1842_v55  ;;  %1733 = vmatmul.mubr.msk.bf16.vlgmr.msra.gmra.mrb[0].mxu0 %vm331_vm0, %v1843_v56 }
  0xab   : > { %1737 = vmatpush3.bf16.msra.mxu0 %v905_v48  ;;  %1713 = vmatpush3.bf16.msra.mxu1 %v573_v52  ;;  %v1238_v48 = vsel %vm1234_vm11, %v1088_v39, %v1237_v37 }
  0xac   : > { %1714 = vmatprep.mubr.msk.bf16.mxu1 %vm331_vm0, %v1844_v58  ;;  %1738 = vmatprep.mubr.msk.bf16.mxu0 %vm331_vm0, %v1845_v59  ;;  %v1244_v55 = vsel %vm1095_vm12, %v1231_v44, %v1238_v48  ;;  %v1255_v58 = vsel %vm1106_vm14, %v1237_v37, %v1249_v50 }
  0xad   : > { %1742 = vmatprep.subr.bf16.mxu0 %v988_v60 }
  0xb3   : > { %v1060_v9 = vpop.permute.xlu0 %1059  ;;  %v1065_v12 = vpop.permute.xlu1 %1064 }
  0xb6   : > { %1715 = vmatmul.mubr.msk.bf16.vlgmr.msra.gmra.mrb[0].mxu1 %vm331_vm0, %v1846_v61  ;;  %1739 = vmatmul.mubr.msk.bf16.vlgmr.msra.gmra.mrb[0].mxu0 %vm331_vm0, %v1847_v62 }
  0xb7   : > { %1743 = vmatpush3.bf16.msra.mxu0 %v988_v60  ;;  %1744 = vmatprep.mubr.msk.bf16.mxu0 %vm331_vm0, %v1848_v63  ;;  %v1279_v31 = vpop.permute.xlu1 %1278  ;;  %v1284_v32 = vpop.permute.xlu0 %1283 }
  0xbc   : > { %v1330_v35 = vpop.permute.xlu1 %1329  ;;  %v1334_v40 = vpop.permute.xlu0 %1333 }
  0xc2   : > { %1745 = vmatmul.mubr.msk.bf16.vlgmr.msra.gmra.mrb[0].mxu0 %vm331_vm0, %v1849_v0  ;;  %vm1496_vm0 = vcmask 0  }
 0x189   : > { %v1716_v3 = vpop.f32.mrb[0].mxu1 }
 0x18a   : > { %v609_v5 = vpop.f32.mrb[1].mxu1 }
 0x18b   : > { %v1717_v6 = vpop.f32.mrb[2].mxu1 }
 0x18c   : > { %v612_v7 = vpop.f32.mrb[3].mxu1 }
 0x195   : > { %v1746_v8 = vpop.f32.mrb[0].mxu0 }
 0x196   : > { %v1748_v13 = vadd.f32 %v1746_v8, %v1716_v3  ;;  %v1024_v14 = vpop.f32.mrb[1].mxu0 }
 0x197   : > { %v2111_v15 = vadd.f32 %v1024_v14, %v609_v5  ;;  %v1747_v16 = vpop.f32.mrb[2].mxu0 }
 0x198   : > { %v1750_v17 = vadd.f32 %v1747_v16, %v1717_v6  ;;  %v2113_v18 = vadd.f32 %v1748_v13, %v1060_v9  ;;  %v1027_v11 = vpop.f32.mrb[3].mxu0 }
 0x199   : > { %v2115_v19 = vadd.f32 %v1027_v11, %v612_v7 }
 0x19a   : > { %v1070_v20 = vadd.f32 %v1750_v17, %v1065_v12  ;;  %v1260_v22 = vrot.slane %v2113_v18, 1  ;;  %v1312_v23 = vrot.slane %v2113_v18, 2 }
 0x19c   : > { %v1257_v21 = vrot.slane %v1070_v20, 2  ;;  %v1261_v24 = vrot.slane %v1070_v20, 1  ;;  %v1662_v20 = vclamps-f32 %v2113_v18, 13.8155 }
 0x19e   : > { %1268 = vrot.lane.b32.xlu1 %v1261_v24, %s1925_s25  ;;  %v1313_v25 = vsel %vm1234_vm11, %v1312_v23, %v1257_v21  ;;  %v1262_v26 = vsel %vm1245_vm13, %v1260_v22, %v1261_v24 }
 0x19f   : > { %1314 = vrot.lane.b32.xlu0 %v1313_v25, %s1925_s25  ;;  %v1264_v27 = vsel %vm1095_vm12, %v1257_v21, %v1262_v26  ;;  %v1083_v25 = vld [vmem:[%s2254_s4] sm:$0x7]  ;;  %v1078_v26 = vmul.f32 0.5, %v1662_v20  ;;  %v1103_v20 = vrot.slane %v1999_v4, 6 }
 0x1a0   : > { %v1161_v44 = vmul.f32 0.0019607844, %v1083_v25 }
 0x1a2   : > { %1266 = vrot.lane.b32.xlu1 %v1264_v27, %s1925_s25 }
 0x1a3   : > { %1054 = vperm.xlu0 %1825, %v1044_v28   ;;  %v1110_v28 = vrot.slane %v1083_v25, 2 }
 0x1a6   : > { %1316 = vrot.lane.b32.xlu1 %v1257_v21, %s1925_s25 }
 0x1a7   : > { %1828 = vset.pattern.permute.xlu0 %v1926_v30 }
 0x1aa   : > { %1049 = vperm.xlu1 %1826, %v1043_v29   ;;  %v1112_v29 = vrot.slane %v1083_v25, 7 }
 0x1ae   : > { %1827 = vset.pattern.permute.xlu1 %v1926_v30 }
 0x210   : > { %v1269_v51 = vpop.permute.xlu1 %1268 }
 0x211   : > { %v1274_v52 = vmul.f32 %v1269_v51, %v1235_v36  ;;  %v1275_v53 = vmul.f32 %v1269_v51, %v1237_v37  ;;  %v1315_v56 = vpop.permute.xlu0 %1314  ;;  %v1311_v16 = vmul.f32 %v1269_v51, %v1248_v46  ;;  %v1310_v12 = vmul.f32 %v1269_v51, %v1246_v45 }
 0x212   : > { %v1320_v61 = vmul.f32 %v1315_v56, %v1243_v54  ;;  %v1321_v62 = vmul.f32 %v1315_v56, %v1244_v55 }
 0x213   : > { %v1289_v59 = vmul.f32 %v1284_v32, %v1275_v53  ;;  %v1288_v60 = vmul.f32 %v1284_v32, %v1274_v52 }
 0x214   : > { %v1267_v63 = vpop.permute.xlu1 %1266 }
 0x215   : > { %v1272_v0 = vmul.f32 %v1267_v63, %v1243_v54  ;;  %v1273_v3 = vmul.f32 %v1267_v63, %v1244_v55  ;;  %v1308_v5 = vmul.f32 %v1267_v63, %v1254_v57  ;;  %v1309_v6 = vmul.f32 %v1267_v63, %v1255_v58  ;;  %1300 = vrot.lane.b32.xlu0 %v1289_v59, %s1915_s10 }
 0x216   : > { %1298 = vrot.lane.b32.xlu1 %v1288_v60, %s1915_s10 }
 0x217   : > { %v1287_v7 = vmul.f32 %v1279_v31, %v1273_v3  ;;  %v1286_v8 = vmul.f32 %v1279_v31, %v1272_v0  ;;  %v1325_v9 = vadd.f32 %v1321_v62, %v1309_v6  ;;  %v1324_v13 = vadd.f32 %v1320_v61, %v1308_v5 }
 0x218   : > { %v1317_v14 = vpop.permute.xlu1 %1316  ;;  %v1081_v31 = vmul.f32 1.442695, %v1078_v26 }
 0x219   : > { %v1322_v17 = vmul.f32 %v1317_v14, %v1235_v36  ;;  %v1323_v11 = vmul.f32 %v1317_v14, %v1237_v37  ;;  %1296 = vrot.lane.b32.xlu0 %v1287_v7, %s1915_s10  ;;  %v1337_v22 = vmul.f32 %v1330_v35, %v1325_v9  ;;  %v1336_v24 = vmul.f32 %v1330_v35, %v1324_v13  ;;  %v1663_v14 = vld [vmem:[%s2251_s1] ss:$0 sm:$0xff] }
 0x21a   : > { %1294 = vrot.lane.b32.xlu1 %v1286_v8, %s1915_s10  ;;  %v1114_v35 = vsel %vm1095_vm12, %v1110_v28, %v1112_v29  ;;  %1850 = vpow2.f32 %v1081_v31 }
 0x21b   : > { %v1327_v21 = vadd.f32 %v1323_v11, %v1311_v16  ;;  %v1326_v23 = vadd.f32 %v1322_v17, %v1310_v12  ;;  %v1091_v16 = vrot.slane %v1995_v2, 7  ;;  %v1102_v17 = vrot.slane %v1995_v2, 6 }
 0x21c   : > { %v1092_v11 = vrot.slane %v1999_v4, 7 }
 0x21d   : > { %1346 = vrot.lane.b32.xlu0 %v1337_v22, %s1915_s10  ;;  %v1339_v27 = vmul.f32 %v1334_v40, %v1327_v21  ;;  %v1338_v30 = vmul.f32 %v1334_v40, %v1326_v23  ;;  %v1096_v21 = vsel %vm1095_vm12, %v1087_v38, %v1091_v16  ;;  %v1107_v22 = vsel %vm1106_vm14, %v1098_v41, %v1102_v17 }
 0x21e   : > { %1344 = vrot.lane.b32.xlu1 %v1336_v24, %s1915_s10  ;;  %v1097_v23 = vsel %vm1095_vm12, %v1088_v39, %v1092_v11  ;;  %v1108_v24 = vsel %vm1106_vm14, %v1099_v42, %v1103_v20 }
 0x221   : > { %1350 = vrot.lane.b32.xlu0 %v1339_v27, %s1915_s10 }
 0x222   : > { %1348 = vrot.lane.b32.xlu1 %v1338_v30, %s1915_s10  ;;  %v1055_v18 = vpop.permute.xlu0 %1054 }
 0x223   : > { %v1068_v32 = vadd.f32 %v2115_v19, %v1055_v18 }
 0x224   : > { %v1851_v19 = vpop.eup %1850 }
 0x225   : > { %v1661_v36 = vclamps-f32 %v1068_v32, 13.8155  ;;  %1138 = vperm.xlu0 %1828, %v1083_v25   ;;  %v1389_v45 = vmul.f32 0.0019607844, %v1851_v19  ;;  %v1376_v51 = vrot.slane %v1851_v19, 6 }
 0x226   : > { %1117 = vperm.xlu1 %1827, %v1114_v35  }
 0x227   : > { %v1077_v37 = vmul.f32 0.5, %v1661_v36  ;;  %v1393_v50 = vrot.slane %v1389_v45, 6 }
 0x229   : > { %v1079_v40 = vmul.f32 1.442695, %v1077_v37  ;;  %1830 = vset.pattern.permute.xlu0 %v1924_v1  ;;  %v1050_v53 = vpop.permute.xlu1 %1049 }
 0x22a   : > { %1829 = vset.pattern.permute.xlu1 %v1922_v10  ;;  %1146 = vperm.xlu0 %1830, %v1084_v43   ;;  %v1067_v58 = vadd.f32 %v2111_v15, %v1050_v53 }
 0x22b   : > { %1852 = vpow2.f32 %v1079_v40  ;;  %1124 = vperm.xlu1 %1829, %v1084_v43  }
 0x22f   : > { %1130 = vperm.xlu1 %1829, %v1083_v25  }
 0x233   : > { %1831 = vset.pattern.permute.xlu1 %v1924_v1 }
 0x234   : > { %1156 = vperm.xlu1 %1831, %v1083_v25  }
 0x235   : > { %v1853_v46 = vpop.eup %1852 }
 0x236   : > { %v1375_v47 = vrot.slane %v1853_v46, 6  ;;  %v1388_v48 = vmul.f32 0.0019607844, %v1853_v46 }
 0x238   : > { %1164 = vperm.xlu1 %1831, %v1161_v44   ;;  %1378 = vrot.lane.b32.xlu0 %v1375_v47, %s1925_s25  ;;  %v1392_v49 = vrot.slane %v1388_v48, 6  ;;  %v1377_v52 = vsel %vm1106_vm14, %v1375_v47, %v1376_v51 }
 0x23a   : > { %v1394_v10 = vsel %vm1106_vm14, %v1392_v49, %v1393_v50 }
 0x23c   : > { %1380 = vrot.lane.b32.xlu1 %v1377_v52, %s1925_s25 }
 0x287   : > { %v1301_v1 = vpop.permute.xlu0 %1300 }
 0x288   : > { %v1299_v54 = vpop.permute.xlu1 %1298 }
 0x289   : > { %v1303_v62 = vsel %vm647_vm4, %v1299_v54, %v1301_v1 }
 0x28a   : > { %v1307_v5 = vadd.f32 %v1303_v62, %v1068_v32 }
 0x28b   : > { %v1297_v55 = vpop.permute.xlu0 %1296 }
 0x28c   : > { %v1295_v56 = vpop.permute.xlu1 %1294 }
 0x28d   : > { %v1302_v57 = vsel %vm647_vm4, %v1295_v56, %v1297_v55 }
 0x28e   : > { %v1306_v60 = vadd.f32 %v1302_v57, %v1067_v58 }
 0x28f   : > { %v1347_v59 = vpop.permute.xlu0 %1346 }
 0x290   : > { %v1345_v61 = vpop.permute.xlu1 %1344 }
 0x291   : > { %v1352_v63 = vsel %vm647_vm4, %v1345_v61, %v1347_v59 }
 0x292   : > { %v1356_v0 = vadd.f32 %v1352_v63, %v1306_v60 }
 0x293   : > { %v1351_v3 = vpop.permute.xlu0 %1350 }
 0x294   : > { %v1360_v6 = vrot.slane %v1356_v0, 5  ;;  %v1349_v7 = vpop.permute.xlu1 %1348 }
 0x295   : > { %v1353_v8 = vsel %vm647_vm4, %v1349_v7, %v1351_v3 }
 0x296   : > { %v1357_v9 = vadd.f32 %v1353_v8, %v1307_v5  ;;  %1363 = vrot.lane.b32.xlu1 %v1360_v6, %s1925_s25 }
 0x298   : > { %v1361_v13 = vrot.slane %v1357_v9, 5 }
 0x29a   : > { %1397 = vrot.lane.b32.xlu1 %v1394_v10, %s1925_s25  ;;  %v1362_v15 = vsel %vm1215_vm15, %v1360_v6, %v1361_v13 }
 0x29b   : > { %1365 = vrot.lane.b32.xlu0 %v1362_v15, %s1925_s25 }
 0x29f   : > { %1395 = vrot.lane.b32.xlu0 %v1392_v49, %s1925_s25 }
 0x2a3   : > { %1201 = vrot.lane.b32.xlu0 %v1663_v14, %s1925_s25 }
 0x2a4   : > { %v1139_v25 = vpop.permute.xlu0 %1138 }
 0x2a5   : > { %v1118_v12 = vpop.permute.xlu1 %1117  ;;  %v1141_v26 = vmul.f32 %v1139_v25, %v1096_v21  ;;  %v1142_v30 = vmul.f32 %v1139_v25, %v1097_v23 }
 0x2a6   : > { %v1135_v27 = vmul.f32 %v1118_v12, %v1107_v22  ;;  %v1120_v28 = vmul.f32 %v1118_v12, %v1096_v21  ;;  %v1136_v18 = vmul.f32 %v1118_v12, %v1108_v24  ;;  %v1121_v38 = vmul.f32 %v1118_v12, %v1097_v23 }
 0x2a8   : > { %v1143_v31 = vadd.f32 %v1141_v26, %v1135_v27  ;;  %v1144_v35 = vadd.f32 %v1142_v30, %v1136_v18 }
 0x2a9   : > { %v1147_v37 = vpop.permute.xlu0 %1146 }
 0x2aa   : > { %v1125_v29 = vpop.permute.xlu1 %1124  ;;  %v1149_v43 = vmul.f32 %v1147_v37, %v1143_v31  ;;  %v1150_v40 = vmul.f32 %v1147_v37, %v1144_v35 }
 0x2ab   : > { %v1127_v32 = vmul.f32 %v1125_v29, %v1120_v28  ;;  %v1128_v41 = vmul.f32 %v1125_v29, %v1121_v38 }
 0x2ad   : > { %v1379_v1 = vpop.permute.xlu0 %1378 }
 0x2ae   : > { %v1131_v36 = vpop.permute.xlu1 %1130 }
 0x2af   : > { %v1133_v39 = vadd.f32 %v1131_v36, %v1127_v32  ;;  %v1134_v19 = vadd.f32 %v1131_v36, %v1128_v41 }
 0x2b1   : > { %v1151_v44 = vadd.f32 %v1149_v43, %v1133_v39  ;;  %v1152_v45 = vadd.f32 %v1150_v40, %v1134_v19 }
 0x2b3   : > { %v1157_v42 = vpop.permute.xlu1 %1156  ;;  %v1153_v46 = vsub.f32 %v1995_v2, %v1151_v44  ;;  %v1154_v47 = vsub.f32 %v1999_v4, %v1152_v45 }
 0x2b5   : > { %v1159_v49 = vmul.f32 %v1157_v42, %v1153_v46  ;;  %v1160_v50 = vmul.f32 %v1157_v42, %v1154_v47 }
 0x2b7   : > { %v1165_v48 = vpop.permute.xlu1 %1164 }
 0x2b8   : > { %v1167_v51 = vadd.f32 %v1165_v48, %v1159_v49  ;;  %v1168_v52 = vadd.f32 %v1165_v48, %v1160_v50  ;;  %v1173_v53 = vsub.f32 %v1159_v49, %v1165_v48  ;;  %v1174_v54 = vsub.f32 %v1160_v50, %v1165_v48 }
 0x2ba   : > { %v1169_v55 = vmul.f32 0.5, %v1167_v51  ;;  %v1170_v57 = vmul.f32 0.5, %v1168_v52  ;;  %v1175_v58 = vmul.f32 0.5, %v1173_v53  ;;  %v1176_v59 = vmul.f32 0.5, %v1174_v54 }
 0x2bb   : > { %v1381_v10 = vpop.permute.xlu1 %1380 }
 0x2bc   : > { %1854 = vtanh.f32 %v1169_v55 }
 0x2bd   : > { %1856 = vtanh.f32 %v1170_v57 }
 0x2be   : > { %1858 = vtanh.f32 %v1175_v58 }
 0x2bf   : > { %1860 = vtanh.f32 %v1176_v59 }
 0x2c6   : > { %v1855_v23 = vpop.eup %1854 }
 0x2c7   : > { %v1857_v25 = vpop.eup %1856 }
 0x2c8   : > { %v1859_v27 = vpop.eup %1858 }
 0x2c9   : > { %v1861_v28 = vpop.eup %1860  ;;  %v1179_v29 = vsub.f32 %v1855_v23, %v1859_v27 }
 0x2ca   : > { %v1180_v30 = vsub.f32 %v1857_v25, %v1861_v28 }
 0x2cb   : > { %v1181_v31 = vmul.f32 0.5, %v1179_v29 }
 0x2cc   : > { %v1182_v35 = vmul.f32 0.5, %v1180_v30 }
 0x2cd   : > { %v1183_v19 = vmax.f32 %v1181_v31, 1.5258789e-05 }
 0x2ce   : > { %v1184_v45 = vmax.f32 %v1182_v35, 1.5258789e-05 }
 0x2cf   : > { %v1185_v52 = vmin.f32 %v1183_v19, 1.0 }
 0x2d0   : > { %v1186_v54 = vmin.f32 %v1184_v45, 1.0 }
 0x308   : > { %v1364_v56 = vpop.permute.xlu1 %1363 }
 0x309   : > { %v1369_v60 = vsub.f32 %v1995_v2, %v1364_v56  ;;  %v1370_v61 = vsub.f32 %v1999_v4, %v1364_v56 }
 0x30b   : > { %v1384_v6 = vmul.f32 %v1379_v1, %v1369_v60  ;;  %v1385_v7 = vmul.f32 %v1379_v1, %v1370_v61 }
 0x30c   : > { %v1398_v8 = vpop.permute.xlu1 %1397 }
 0x30d   : > { %v1366_v62 = vpop.permute.xlu0 %1365 }
 0x30e   : > { %v1371_v63 = vsub.f32 %v2133_v33, %v1366_v62  ;;  %v1372_v0 = vsub.f32 %v2136_v34, %v1366_v62 }
 0x310   : > { %v1386_v3 = vmul.f32 %v1381_v10, %v1371_v63  ;;  %v1387_v5 = vmul.f32 %v1381_v10, %v1372_v0 }
 0x311   : > { %v1396_v9 = vpop.permute.xlu0 %1395 }
 0x312   : > { %v1403_v13 = vadd.f32 %v1398_v8, %v1386_v3  ;;  %v1404_v15 = vadd.f32 %v1398_v8, %v1387_v5  ;;  %v1415_v2 = vsub.f32 %v1386_v3, %v1398_v8  ;;  %v1416_v14 = vsub.f32 %v1387_v5, %v1398_v8 }
 0x313   : > { %v1401_v4 = vadd.f32 %v1396_v9, %v1384_v6  ;;  %v1402_v16 = vadd.f32 %v1396_v9, %v1385_v7  ;;  %v1413_v12 = vsub.f32 %v1384_v6, %v1396_v9  ;;  %v1414_v20 = vsub.f32 %v1385_v7, %v1396_v9 }
 0x314   : > { %v1407_v17 = vmul.f32 0.5, %v1403_v13  ;;  %v1408_v11 = vmul.f32 0.5, %v1404_v15  ;;  %v1419_v33 = vmul.f32 0.5, %v1415_v2  ;;  %v1420_v34 = vmul.f32 0.5, %v1416_v14 }
 0x315   : > { %v1405_v21 = vmul.f32 0.5, %v1401_v4  ;;  %v1406_v22 = vmul.f32 0.5, %v1402_v16  ;;  %v1417_v24 = vmul.f32 0.5, %v1413_v12  ;;  %v1418_v26 = vmul.f32 0.5, %v1414_v20  ;;  %v1202_v13 = vpop.permute.xlu0 %1201 }
 0x316   : > { %1862 = vtanh.f32 %v1407_v17 }
 0x317   : > { %1864 = vtanh.f32 %v1408_v11 }
 0x318   : > { %1866 = vtanh.f32 %v1419_v33 }
 0x319   : > { %1868 = vtanh.f32 %v1420_v34 }
 0x31a   : > { %1870 = vtanh.f32 %v1405_v21 }
 0x31b   : > { %1872 = vtanh.f32 %v1406_v22 }
 0x31c   : > { %1874 = vtanh.f32 %v1417_v24 }
 0x31d   : > { %1876 = vtanh.f32 %v1418_v26 }
 0x320   : > { %v1863_v18 = vpop.eup %1862 }
 0x321   : > { %v1865_v38 = vpop.eup %1864 }
 0x322   : > { %v1867_v32 = vpop.eup %1866 }
 0x323   : > { %v1869_v41 = vpop.eup %1868  ;;  %v1427_v36 = vsub.f32 %v1863_v18, %v1867_v32 }
 0x324   : > { %v1871_v37 = vpop.eup %1870  ;;  %v1428_v43 = vsub.f32 %v1865_v38, %v1869_v41 }
 0x325   : > { %v1873_v39 = vpop.eup %1872  ;;  %v1431_v40 = vmul.f32 0.5, %v1427_v36 }
 0x326   : > { %v1875_v44 = vpop.eup %1874  ;;  %v1432_v42 = vmul.f32 0.5, %v1428_v43 }
 0x327   : > { %v1877_v46 = vpop.eup %1876  ;;  %v1435_v47 = vmax.f32 %v1431_v40, 1.5258789e-05  ;;  %v1425_v48 = vsub.f32 %v1871_v37, %v1875_v44 }
 0x328   : > { %v1436_v49 = vmax.f32 %v1432_v42, 1.5258789e-05  ;;  %v1426_v50 = vsub.f32 %v1873_v39, %v1877_v46 }
 0x329   : > { %v1439_v51 = vmin.f32 %v1435_v47, 1.0  ;;  %v1429_v10 = vmul.f32 0.5, %v1425_v48 }
 0x32a   : > { %v1440_v53 = vmin.f32 %v1436_v49, 1.0  ;;  %v1430_v1 = vmul.f32 0.5, %v1426_v50 }
 0x32b   : > { %1878 = vlog2.f32 %v1439_v51  ;;  %v1433_v55 = vmax.f32 %v1429_v10, 1.5258789e-05 }
 0x32c   : > { %1880 = vlog2.f32 %v1440_v53  ;;  %v1434_v56 = vmax.f32 %v1430_v1, 1.5258789e-05 }
 0x32d   : > { %v1437_v57 = vmin.f32 %v1433_v55, 1.0  ;;  %1882 = vlog2.f32 %v1185_v52 }
 0x32e   : > { %v1438_v58 = vmin.f32 %v1434_v56, 1.0  ;;  %1884 = vlog2.f32 %v1186_v54 }
 0x32f   : > { %1886 = vlog2.f32 %v1437_v57 }
 0x330   : > { %1888 = vlog2.f32 %v1438_v58 }
 0x335   : > { %v1879_v59 = vpop.eup %1878 }
 0x336   : > { %v1881_v60 = vpop.eup %1880  ;;  %v1446_v61 = vmul.f32 0.6931472, %v1879_v59 }
 0x337   : > { %v1883_v62 = vpop.eup %1882  ;;  %v1448_v63 = vmul.f32 0.6931472, %v1881_v60 }
 0x338   : > { %v1885_v0 = vpop.eup %1884  ;;  %v1451_v3 = vmul.f32 1.442695, %v1446_v61  ;;  %v1188_v14 = vmul.f32 0.6931472, %v1883_v62 }
 0x339   : > { %v1887_v5 = vpop.eup %1886  ;;  %v1452_v6 = vmul.f32 1.442695, %v1448_v63  ;;  %v1190_v17 = vmul.f32 0.6931472, %v1885_v0 }
 0x33a   : > { %v1889_v7 = vpop.eup %1888  ;;  %v1455_v8 = vsub.f32 0.0, %v1451_v3  ;;  %v1442_v9 = vmul.f32 0.6931472, %v1887_v5  ;;  %v1192_v22 = vmul.f32 1.442695, %v1188_v14 }
 0x33b   : > { %v1456_v15 = vsub.f32 0.0, %v1452_v6  ;;  %v1444_v2 = vmul.f32 0.6931472, %v1889_v7  ;;  %v1193_v24 = vmul.f32 1.442695, %v1190_v17 }
 0x33c   : > { %v1459_v4 = vmul.f32 %v1455_v8, %v1202_v13  ;;  %v1449_v16 = vmul.f32 1.442695, %v1442_v9  ;;  %v1194_v28 = vsub.f32 0.0, %v1192_v22 }
 0x33d   : > { %v1460_v11 = vmul.f32 %v1456_v15, %v1202_v13  ;;  %v1450_v33 = vmul.f32 1.442695, %v1444_v2  ;;  %v1195_v30 = vsub.f32 0.0, %v1193_v24 }
 0x33e   : > { %v1466_v12 = vrot.slane %v1459_v4, 3  ;;  %v1453_v34 = vsub.f32 0.0, %v1449_v16  ;;  %v1204_v38 = vmul.f32 %v1202_v13, %v1194_v28 }
 0x33f   : > { %v1469_v20 = vrot.slane %v1460_v11, 3  ;;  %v1454_v21 = vsub.f32 0.0, %v1450_v33  ;;  %v1205_v31 = vmul.f32 %v1202_v13, %v1195_v30 }
 0x340   : > { %1475 = vrot.lane.b32.xlu1 %v1466_v12, %s1915_s10  ;;  %v1457_v23 = vmul.f32 %v1453_v34, %v1202_v13 }
 0x341   : > { %1477 = vrot.lane.b32.xlu0 %v1469_v20, %s1915_s10  ;;  %v1458_v25 = vmul.f32 %v1454_v21, %v1202_v13 }
 0x342   : > { %v1465_v26 = vrot.slane %v1457_v23, 3 }
 0x343   : > { %v1468_v27 = vrot.slane %v1458_v25, 3 }
 0x344   : > { %v1467_v29 = vsel %vm339_vm2, %v1465_v26, %v1466_v12 }
 0x345   : > { %v1470_v18 = vsel %vm339_vm2, %v1468_v27, %v1469_v20  ;;  %1471 = vrot.lane.b32.xlu1 %v1467_v29, %s1915_s10 }
 0x346   : > { %1473 = vrot.lane.b32.xlu0 %v1470_v18, %s1915_s10 }
 0x349   : > { %1208 = vrot.lane.b32.xlu1 %v1204_v38, %s1915_s10 }
 0x34a   : > { %1210 = vrot.lane.b32.xlu0 %v1205_v31, %s1915_s10 }
 0x3b2   : > { %v1476_v32 = vpop.permute.xlu1 %1475 }
 0x3b3   : > { %v1478_v35 = vpop.permute.xlu0 %1477 }
 0x3b4   : > { %v1480_v41 = vsel %vm647_vm4, %v1476_v32, %v1478_v35 }
 0x3b5   : > { %v1483_v39 = vsel %vm1095_vm12, %v1480_v41, 0.0 }
 0x3b7   : > { %v1472_v36 = vpop.permute.xlu1 %1471 }
 0x3b8   : > { %v1474_v37 = vpop.permute.xlu0 %1473 }
 0x3b9   : > { %v1479_v43 = vsel %vm647_vm4, %v1472_v36, %v1474_v37 }
 0x3ba   : > { %v1484_v40 = vadd.f32 %v1483_v39, %v1479_v43 }
 0x3bb   : > { %v1209_v19 = vpop.permute.xlu1 %1208 }
 0x3bc   : > { %v1211_v44 = vpop.permute.xlu0 %1210  ;;  %1485 = vadd.xlane.f32.xlu0 %v1484_v40 }
 0x3bd   : > { %v1213_v42 = vsel %vm647_vm4, %v1209_v19, %v1211_v44 }
 0x3be   : > { %v1216_v45 = vsel %vm1215_vm15, %v1213_v42, 0.0 }
 0x3bf   : > { %1217 = vadd.xlane.f32.xlu1 %v1216_v45 }
 0x449   : > { %v1486_v46 = vpop.xlane.xlu0 %1485 }
 0x44a   : > { %v1487_v47 = vrot.slane %v1486_v46, 4 }
 0x44c   : > { %v1488_v48 = vadd.f32 %v1487_v47, %v1486_v46  ;;  %v1218_v49 = vpop.xlane.xlu1 %1217 }
 0x44d   : > { %v1219_v50 = vrot.slane %v1218_v49, 4 }
 0x44e   : > { %v1489_v51 = vrot.slane %v1488_v48, 2 }
 0x44f   : > { %v1220_v10 = vadd.f32 %v1219_v50, %v1218_v49 }
 0x450   : > { %v1490_v52 = vadd.f32 %v1489_v51, %v1488_v48 }
 0x451   : > { %v1221_v53 = vrot.slane %v1220_v10, 2 }
 0x452   : > { %v1491_v54 = vrot.slane %v1490_v52, 1 }
 0x453   : > { %v1222_v1 = vadd.f32 %v1221_v53, %v1220_v10 }
 0x454   : > { %v1492_v57 = vadd.f32 %v1491_v54, %v1490_v52 }
 0x455   : > { %v1223_v55 = vrot.slane %v1222_v1, 1 }
 0x457   : > { %v1224_v56 = vadd.f32 %v1223_v55, %v1222_v1 }
 0x459   : > { %1780 = vpush %v1224_v56 }
 0x45a   : > { %1782 = vpush %v1492_v57 }
 0x48a   : > { %s1781_s10 = spop %1780 }
 0x48b   : > { %s1783_s13 = spop %1782 }
 0x48c   : > { %s1494_s17 = sadd.f32 %s1783_s13, %s1781_s10 }
 0x48e   : > { %v1495_v58 = vstv %s1494_s17 }
 0x48f   : > { %1497 = vst.msk [vmem:[%s295_s16] sm:$0x1] %vm1496_vm0, %v1495_v58 }
 0x490 PF: > { %s16_s23 = sadd.s32 1, %s1912_s23   ;;  %s2257_s21 = smov %s1908_s22 }
 0x491   : > { %p13_p5 = scmp.ge.s32.totalorder %s16_s23, 4   ;;  %s2258_s22 = smov %s2260_s24 }
 0x493   :  { %15 = sbr.rel (!%p13_p5) target bundleno = 2 (0x2), region = 85 }

</bundles_post_ra>
